<compile_context>
chip_gen: v7x
topology: tpu7x:2x2x1
jax: 0.10.0
libtpu: 0.0.40
codegen_flags: <defaults>
</compile_context>

<pallas_src>
import math

import jax
import jax.numpy as jnp
from jax.experimental import pallas as pl
from jax.experimental.pallas import tpu as pltpu

INPUT_DIM = 768
HIDDEN_DIM = 512
HIDDEN2_DIM = HIDDEN_DIM // 2  # 256
BN_EPS = 1e-5


def _round_up(n, m):
    return ((n + m - 1) // m) * m


def _mlp_kernel(x_ref, w1_ref, b1_ref, w2_ref, b2_ref, w3_ref, b3_ref, out_ref):
    # x arrives as f32 straight from HBM; cast to bf16 on the VPU (hidden under
    # the MXU work) instead of a separate wrapper-side cast pass.
    xb = x_ref[...].astype(jnp.bfloat16)

    # Layer 1: Linear (+ folded eval-BatchNorm) -> ReLU. Dropout = identity (eval).
    h1 = jnp.dot(xb, w1_ref[...], preferred_element_type=jnp.float32)
    h1 = jnp.maximum(h1 + b1_ref[...], 0.0)

    # Layer 2: Linear (+ folded eval-BatchNorm) -> ReLU.
    h2 = jnp.dot(h1.astype(jnp.bfloat16), w2_ref[...],
                 preferred_element_type=jnp.float32)
    h2 = jnp.maximum(h2 + b2_ref[...], 0.0)

    # Output head Linear(256, 1): N=1 would waste the MXU, so do it on the
    # VPU (broadcast multiply) + XLU lane reduction; rides in MXU slack.
    out = jnp.sum(h2 * w3_ref[...], axis=-1, keepdims=True) + b3_ref[...]
    out_ref[...] = out.astype(out_ref.dtype)


def _pick_tile_b(B, requested):
    """Batch tile: big (amortize per-step overhead), 8-aligned, and with >=2
    grid steps when possible so v7x's 2 TensorCores both get work."""
    t = min(requested, _round_up(B, 8))
    t = max(8, (t // 8) * 8)
    if pl.cdiv(B, t) < 2 and B > 8:
        half = _round_up(-(-B // 2), 128 if B >= 256 else 8)
        t = max(8, min(t, half))
    return t


def classifier_mlp_forward(x, folded_params, *, tile_b=1024):
    """x: [B, INPUT_DIM] float32. Returns [B] float32 (== forward(x).reshape(-1))."""
    w1, b1, w2, b2, w3, b3 = folded_params
    B = x.shape[0]

    tile_b = _pick_tile_b(B, tile_b)
    # Tail block is clipped by Pallas; rows are independent so the garbage rows
    # read in a clipped tail never contaminate valid rows, and their output
    # writes are dropped. (Do NOT add any cross-row reduction to the kernel.)
    num_tiles = pl.cdiv(B, tile_b)

    const = lambda a: pl.BlockSpec(a.shape, lambda i: (0, 0))

    flops = 2 * B * (INPUT_DIM * HIDDEN_DIM + HIDDEN_DIM * HIDDEN2_DIM + HIDDEN2_DIM)
    bytes_accessed = (x.size * x.dtype.itemsize          # f32 x, single pass
                      + w1.size * 2 + w2.size * 2        # bf16 weights
                      + (b1.size + b2.size + w3.size + b3.size) * 4
                      + B * 4)                           # f32 output column

    out = pl.pallas_call(
        _mlp_kernel,
        out_shape=jax.ShapeDtypeStruct((B, 1), jnp.float32),
        grid_spec=pltpu.PrefetchScalarGridSpec(
            num_scalar_prefetch=0,
            grid=(num_tiles,),
            in_specs=[
                pl.BlockSpec((tile_b, INPUT_DIM), lambda i: (i, 0)),  # f32 x tile
                const(w1), const(b1),    # constant index_maps -> VMEM-resident
                const(w2), const(b2),
                const(w3), const(b3),
            ],
            out_specs=pl.BlockSpec((tile_b, 1), lambda i: (i, 0)),
        ),
        compiler_params=pltpu.CompilerParams(
            dimension_semantics=("parallel",),
            vmem_limit_bytes=32 * 1024 * 1024,   # fits tile_b=1024 f32 x on v5e/v7x
        ),
        cost_estimate=pl.CostEstimate(
            flops=flops, bytes_accessed=bytes_accessed, transcendentals=0),
    )(x, w1, b1, w2, b2, w3, b3)
    return out.reshape(-1)


def init_raw_params(key):
    """PyTorch-equivalent params: Linear weights stored as [in, out] + BN stats."""
    ks = jax.random.split(key, 5)

    def linear_init(k, fan_in, fan_out):
        bound = 1.0 / math.sqrt(fan_in)
        kw, kb = jax.random.split(k)
        w = jax.random.uniform(kw, (fan_in, fan_out), jnp.float32, -bound, bound)
        b = jax.random.uniform(kb, (1, fan_out), jnp.float32, -bound, bound)
        return w, b

    def bn_init(k, dim):
        kg, kb, km, kv = jax.random.split(k, 4)
        gamma = 1.0 + 0.1 * jax.random.normal(kg, (1, dim), jnp.float32)
        beta = 0.1 * jax.random.normal(kb, (1, dim), jnp.float32)
        mean = 0.1 * jax.random.normal(km, (1, dim), jnp.float32)
        var = jax.random.uniform(kv, (1, dim), jnp.float32, 0.5, 1.5)
        return gamma, beta, mean, var

    w1, b1 = linear_init(ks[0], INPUT_DIM, HIDDEN_DIM)
    w2, b2 = linear_init(ks[1], HIDDEN_DIM, HIDDEN2_DIM)
    w3, b3 = linear_init(ks[2], HIDDEN2_DIM, 1)
    bn1 = bn_init(ks[3], HIDDEN_DIM)
    bn2 = bn_init(ks[4], HIDDEN2_DIM)
    return (w1, b1, bn1, w2, b2, bn2, w3, b3)


def fold_params(raw):
    """Fold eval-mode BatchNorm1d into the preceding Linear; pre-cast the MXU
    operands (w1, w2) to bf16 once here instead of on every forward call."""
    (w1, b1, (g1, be1, m1, v1), w2, b2, (g2, be2, m2, v2), w3, b3) = raw

    def fold(w, b, g, be, m, v):
        s = g / jnp.sqrt(v + BN_EPS)      # [1, out] per-feature scale
        return w * s, (b - m) * s + be    # column-scaled W, shifted bias

    w1f, b1f = fold(w1, b1, g1, be1, m1, v1)
    w2f, b2f = fold(w2, b2, g2, be2, m2, v2)
    return (w1f.astype(jnp.bfloat16), b1f,
            w2f.astype(jnp.bfloat16), b2f,
            w3.reshape(1, HIDDEN2_DIM), b3.reshape(1, 1))


def reference_forward(x, folded_params):
    """Plain-jnp forward mirroring the kernel's bf16 matmul quantization."""
    w1, b1, w2, b2, w3, b3 = folded_params
    q = lambda a: a.astype(jnp.bfloat16).astype(jnp.float32)
    h1 = jnp.maximum(q(x) @ w1.astype(jnp.float32) + b1, 0.0)
    h2 = jnp.maximum(q(h1) @ w2.astype(jnp.float32) + b2, 0.0)
    return (jnp.sum(h2 * w3, axis=-1, keepdims=True) + b3).reshape(-1)


# TODO(synk): training-mode Dropout / BatchNorm running-stat updates are out of
# scope; this kernel implements the eval-mode forward pass only (and, like the
# PyTorch forward(), never applies self.sigmoid).

if __name__ == "__main__":
    key = jax.random.PRNGKey(0)
    kx, kp = jax.random.split(key)
    folded = fold_params(init_raw_params(kp))

    # B=8: single tile.  B=20: exercises the multi-tile path (v7x split) and
    # the clipped tail block with no wrapper-side padding.
    for B in (8, 20):
        x = jax.random.normal(jax.random.fold_in(kx, B), (B, INPUT_DIM), jnp.float32)
        out = jax.block_until_ready(classifier_mlp_forward(x, folded))
        ref = reference_forward(x, folded)
        assert out.shape == (B,), out.shape
        assert jnp.allclose(out, ref, atol=2e-3, rtol=2e-3), (B, out, ref)

    print("KERNEL_OK")
</pallas_src>

<mosaic_0001>
module attributes {stable_mosaic.version = 11 : i64} {
  func.func @_mlp_kernel(%arg0: i32, %arg1: memref<8x768xf32, #tpu.memory_space<vmem>>, %arg2: memref<768x512xbf16, #tpu.memory_space<vmem>>, %arg3: memref<1x512xf32, #tpu.memory_space<vmem>>, %arg4: memref<512x256xbf16, #tpu.memory_space<vmem>>, %arg5: memref<1x256xf32, #tpu.memory_space<vmem>>, %arg6: memref<1x256xf32, #tpu.memory_space<vmem>>, %arg7: memref<1x1xf32, #tpu.memory_space<vmem>>, %arg8: memref<8x1xf32, #tpu.memory_space<vmem>>) attributes {dimension_semantics = [#tpu.dimension_semantics<parallel>], iteration_bounds = array<i64: 1>, scalar_prefetch = 0 : i64, scratch_operands = 0 : i64, tpu.core_type = #tpu.core_type<tc>, window_params = [{transform_indices = @transform_0, window_bounds = array<i64: 8, 768>}, {pipeline_mode = #tpu.pipeline_mode<synchronous>, transform_indices = @transform_1, window_bounds = array<i64: 768, 512>}, {pipeline_mode = #tpu.pipeline_mode<synchronous>, transform_indices = @transform_2, window_bounds = array<i64: 1, 512>}, {pipeline_mode = #tpu.pipeline_mode<synchronous>, transform_indices = @transform_3, window_bounds = array<i64: 512, 256>}, {pipeline_mode = #tpu.pipeline_mode<synchronous>, transform_indices = @transform_4, window_bounds = array<i64: 1, 256>}, {pipeline_mode = #tpu.pipeline_mode<synchronous>, transform_indices = @transform_5, window_bounds = array<i64: 1, 256>}, {pipeline_mode = #tpu.pipeline_mode<synchronous>, transform_indices = @transform_6, window_bounds = array<i64: 1, 1>}, {transform_indices = @transform_7, window_bounds = array<i64: 8, 1>}]} {
    %c0 = arith.constant 0 : index
    %c0_0 = arith.constant 0 : index
    %0 = vector.load %arg1[%c0, %c0_0] : memref<8x768xf32, #tpu.memory_space<vmem>>, vector<8x768xf32>
    %1 = arith.truncf %0 : vector<8x768xf32> to vector<8x768xbf16>
    %c0_1 = arith.constant 0 : index
    %c0_2 = arith.constant 0 : index
    %2 = vector.load %arg2[%c0_1, %c0_2] : memref<768x512xbf16, #tpu.memory_space<vmem>>, vector<768x512xbf16>
    %cst = arith.constant dense<0.000000e+00> : vector<8x512xf32>
    %3 = tpu.matmul %1, %2, %cst {dimension_numbers = #tpu.dot_dimension_numbers<[1], [0], [0], [1], [0, 0, 1, 1], [], []>} : vector<8x768xbf16>, vector<768x512xbf16>, vector<8x512xf32> -> vector<8x512xf32>
    %c0_3 = arith.constant 0 : index
    %c0_4 = arith.constant 0 : index
    %4 = vector.load %arg3[%c0_3, %c0_4] : memref<1x512xf32, #tpu.memory_space<vmem>>, vector<1x512xf32>
    %5 = vector.broadcast %4 : vector<1x512xf32> to vector<8x512xf32>
    %6 = arith.addf %3, %5 : vector<8x512xf32>
    %cst_5 = arith.constant 0.000000e+00 : f32
    %7 = vector.broadcast %cst_5 : f32 to vector<8x512xf32>
    %8 = arith.maximumf %6, %7 : vector<8x512xf32>
    %9 = arith.truncf %8 : vector<8x512xf32> to vector<8x512xbf16>
    %c0_6 = arith.constant 0 : index
    %c0_7 = arith.constant 0 : index
    %10 = vector.load %arg4[%c0_6, %c0_7] : memref<512x256xbf16, #tpu.memory_space<vmem>>, vector<512x256xbf16>
    %cst_8 = arith.constant dense<0.000000e+00> : vector<8x256xf32>
    %11 = tpu.matmul %9, %10, %cst_8 {dimension_numbers = #tpu.dot_dimension_numbers<[1], [0], [0], [1], [0, 0, 1, 1], [], []>} : vector<8x512xbf16>, vector<512x256xbf16>, vector<8x256xf32> -> vector<8x256xf32>
    %c0_9 = arith.constant 0 : index
    %c0_10 = arith.constant 0 : index
    %12 = vector.load %arg5[%c0_9, %c0_10] : memref<1x256xf32, #tpu.memory_space<vmem>>, vector<1x256xf32>
    %13 = vector.broadcast %12 : vector<1x256xf32> to vector<8x256xf32>
    %14 = arith.addf %11, %13 : vector<8x256xf32>
    %cst_11 = arith.constant 0.000000e+00 : f32
    %15 = vector.broadcast %cst_11 : f32 to vector<8x256xf32>
    %16 = arith.maximumf %14, %15 : vector<8x256xf32>
    %c0_12 = arith.constant 0 : index
    %c0_13 = arith.constant 0 : index
    %17 = vector.load %arg6[%c0_12, %c0_13] : memref<1x256xf32, #tpu.memory_space<vmem>>, vector<1x256xf32>
    %18 = vector.broadcast %17 : vector<1x256xf32> to vector<8x256xf32>
    %19 = arith.mulf %16, %18 : vector<8x256xf32>
    %cst_14 = arith.constant dense<0.000000e+00> : vector<8xf32>
    %20 = vector.multi_reduction <add>, %19, %cst_14 [1] : vector<8x256xf32> to vector<8xf32>
    %21 = vector.shape_cast %20 : vector<8xf32> to vector<8x1xf32>
    %c0_15 = arith.constant 0 : index
    %c0_16 = arith.constant 0 : index
    %22 = vector.load %arg7[%c0_15, %c0_16] : memref<1x1xf32, #tpu.memory_space<vmem>>, vector<1x1xf32>
    %23 = vector.broadcast %22 : vector<1x1xf32> to vector<8x1xf32>
    %24 = arith.addf %21, %23 : vector<8x1xf32>
    %c0_17 = arith.constant 0 : index
    %c0_18 = arith.constant 0 : index
    %25 = vector.load %arg8[%c0_17, %c0_18] : memref<8x1xf32, #tpu.memory_space<vmem>>, vector<8x1xf32>
    tpu.vector_store %arg8[%c0_17, %c0_18], %24 {strides = array<i32>} : memref<8x1xf32, #tpu.memory_space<vmem>>, vector<8x1xf32>,
    return
  }
  func.func @transform_0(%arg0: i32) -> (i32, i32) {
    %c0_i32 = arith.constant 0 : i32
    %c0_i32_0 = arith.constant 0 : i32
    return %arg0, %c0_i32 : i32, i32
  }
  func.func @transform_1(%arg0: i32) -> (i32, i32) {
    %c0_i32 = arith.constant 0 : i32
    %c0_i32_0 = arith.constant 0 : i32
    %c0_i32_1 = arith.constant 0 : i32
    return %c0_i32, %c0_i32_0 : i32, i32
  }
  func.func @transform_2(%arg0: i32) -> (i32, i32) {
    %c0_i32 = arith.constant 0 : i32
    %c0_i32_0 = arith.constant 0 : i32
    %c0_i32_1 = arith.constant 0 : i32
    return %c0_i32, %c0_i32_0 : i32, i32
  }
  func.func @transform_3(%arg0: i32) -> (i32, i32) {
    %c0_i32 = arith.constant 0 : i32
    %c0_i32_0 = arith.constant 0 : i32
    %c0_i32_1 = arith.constant 0 : i32
    return %c0_i32, %c0_i32_0 : i32, i32
  }
  func.func @transform_4(%arg0: i32) -> (i32, i32) {
    %c0_i32 = arith.constant 0 : i32
    %c0_i32_0 = arith.constant 0 : i32
    %c0_i32_1 = arith.constant 0 : i32
    return %c0_i32, %c0_i32_0 : i32, i32
  }
  func.func @transform_5(%arg0: i32) -> (i32, i32) {
    %c0_i32 = arith.constant 0 : i32
    %c0_i32_0 = arith.constant 0 : i32
    %c0_i32_1 = arith.constant 0 : i32
    return %c0_i32, %c0_i32_0 : i32, i32
  }
  func.func @transform_6(%arg0: i32) -> (i32, i32) {
    %c0_i32 = arith.constant 0 : i32
    %c0_i32_0 = arith.constant 0 : i32
    %c0_i32_1 = arith.constant 0 : i32
    return %c0_i32, %c0_i32_0 : i32, i32
  }
  func.func @transform_7(%arg0: i32) -> (i32, i32) {
    %c0_i32 = arith.constant 0 : i32
    %c0_i32_0 = arith.constant 0 : i32
    return %arg0, %c0_i32 : i32, i32
  }
}

</mosaic_0001>

<bundles_post_ra>
// kernel: tpu_custom_call.1
= control target key start
LH: loop header
LB: loop body
LE: loop exit
PB: predicated region body
PF: predicated region fallthrough
CT: control target
= control target key end

     0   :  { %s2906_s0 = inlined_call_operand.hbm [shape: f32[8,768], index: 0, kind: input, shape index: {}]   ;;  %s2907_s1 = inlined_call_operand.hbm [shape: bf16[768,512], index: 1, kind: input, shape index: {}]   ;;  %s2908_s2 = inlined_call_operand.vmem [shape: f32[1,512], index: 2, kind: input, shape index: {}]   ;;  %s2909_s3 = inlined_call_operand.hbm [shape: bf16[512,256], index: 3, kind: input, shape index: {}]   ;;  %s2910_s4 = inlined_call_operand.vmem [shape: f32[1,256], index: 4, kind: input, shape index: {}]   ;;  %s2911_s5 = inlined_call_operand.vmem [shape: f32[1,256], index: 5, kind: input, shape index: {}]   ;;  %s2912_s6 = inlined_call_operand.<no memory space> [shape: f32[1,1], index: 6, kind: input, shape index: {}]   ;;  %s2913_s7 = inlined_call_operand.vmem [shape: f32[8,1], index: 7, kind: output, shape index: {}]  }
   0x1   :  { %v12_v0 = vstv %s2912_s6 }
   0x2   :  { %13 = vst [vmem:[#allocation2] sm:$0x1] %v12_v0 }
   0x3   :  { %14 = vsyncpa [#allocation4], 0 }
   0x4   :  { %15 = vsyncpa [#allocation6], 0  ;;  %s2762_s26 = smov [#allocation5]   ;;  %s2692_s30 = scalar_lea.hbm %s2907_s1, 24576 }
   0x5   :  { %s31_s27 = sshll.u32 %s2762_s26, 4  ;;  %p2693_p0 = scmp.ne.s32.totalorder %s2907_s1, %s2692_s30  ;;  %s32_s27 = int_to_ptr.vmem [resolvable:$true] %s31_s27 }
   0x6   :  { %p2696_p1 = scmp.lt.u32.totalorder %s2692_s30, %s2907_s1 }
   0x8   :  { %p2698_p2 = pnand %p2696_p1, %p2693_p0 }
   0xa   :  { %2701 = shalt.err (!%p2698_p2)
}
   0xb   :  { %s2702_s6 = scalar_lea.vmem %s32_s27, 24576  ;;  %p2707_p4 = scmp.lt.s32.totalorder %s32_s27, %s32_s27 }
   0xc   :  { %p2703_p3 = scmp.ne.s32.totalorder %s32_s27, %s2702_s6  ;;  %p2708_p5 = scmp.lt.s32.totalorder %s2702_s6, %s2702_s6 }
   0xe   :  { %p2709_p6 = por %p2708_p5, %p2707_p4 }
  0x10   :  { %p2710_p7 = pnand %p2709_p6, %p2703_p3 }
  0x12   :  { %2713 = shalt.err (!%p2710_p7)
}
  0x13   :  { %s2763_s12 = smov 256   ;;  %s2764_s13 = smov 16  }
  0x14   :  { %37 = dma.hbm_to_vmem [thread:$0]  %s2907_s1, 24576, %s32_s27, [#allocation6], %s2763_s12, %s2763_s12, %s2764_s13  }
  0x15   :  { %s2765_s16 = smov [#allocation3]   ;;  %s2766_s18 = smov [#allocation7]  }
  0x16   :  { %s22_s17 = sshll.u32 %s2765_s16, 4  ;;  %s45_s19 = sshll.u32 %s2766_s18, 4  ;;  %s23_s17 = int_to_ptr.vmem [resolvable:$true] %s22_s17  ;;  %s46_s19 = int_to_ptr.vmem [resolvable:$true] %s45_s19 }
  0x17   :  { %s2714_s22 = scalar_lea.hbm %s2906_s0, 768 }
  0x18   :  { %p2715_p8 = scmp.ne.s32.totalorder %s2906_s0, %s2714_s22  ;;  %p2718_p9 = scmp.lt.u32.totalorder %s2714_s22, %s2906_s0 }
  0x1a   :  { %p2720_p10 = pnand %p2718_p9, %p2715_p8 }
  0x1c   :  { %2723 = shalt.err (!%p2720_p10)
}
  0x1d   :  { %s2724_s1 = scalar_lea.vmem %s23_s17, 768  ;;  %p2729_p12 = scmp.lt.s32.totalorder %s23_s17, %s23_s17 }
  0x1e   :  { %p2725_p11 = scmp.ne.s32.totalorder %s23_s17, %s2724_s1  ;;  %p2730_p13 = scmp.lt.s32.totalorder %s2724_s1, %s2724_s1 }
  0x20   :  { %p2731_p0 = por %p2730_p13, %p2729_p12 }
  0x22   :  { %p2732_p1 = pnand %p2731_p0, %p2725_p11 }
  0x24   :  { %2735 = shalt.err (!%p2732_p1)
}
  0x25   :  { %25 = dma.hbm_to_vmem [thread:$0]  %s2906_s0, 768, %s23_s17, [#allocation4]  }
  0x26   :  { %s2736_s8 = scalar_lea.hbm %s2909_s3, 8192 }
  0x27   :  { %p2737_p2 = scmp.ne.s32.totalorder %s2909_s3, %s2736_s8  ;;  %p2740_p3 = scmp.lt.u32.totalorder %s2736_s8, %s2909_s3 }
  0x29   :  { %p2742_p4 = pnand %p2740_p3, %p2737_p2 }
  0x2b   :  { %2745 = shalt.err (!%p2742_p4)
}
  0x2c   :  { %s2746_s12 = scalar_lea.vmem %s46_s19, 8192  ;;  %p2751_p6 = scmp.lt.s32.totalorder %s46_s19, %s46_s19 }
  0x2d   :  { %p2747_p5 = scmp.ne.s32.totalorder %s46_s19, %s2746_s12  ;;  %p2752_p7 = scmp.lt.s32.totalorder %s2746_s12, %s2746_s12 }
  0x2f   :  { %p2753_p8 = por %p2752_p7, %p2751_p6 }
  0x31   :  { %p2754_p9 = pnand %p2753_p8, %p2747_p5 }
  0x33   :  { %2757 = shalt.err (!%p2754_p9)
}
  0x34   :  { %s2767_s0 = smov 128   ;;  %s2768_s13 = smov 8  }
  0x35   :  { %51 = dma.hbm_to_vmem [thread:$0]  %s2909_s3, 8192, %s46_s19, [#allocation6], %s2767_s0, %s2767_s0, %s2768_s13  }
  0x36   :  { %2758 = dma.done.wait [#allocation4], 768  }
  0x37   :  { %2759 = vsyncadd [#allocation4], 4294966528 }
  0x38   :  { %2760 = dma.done.wait [#allocation6], 32768  }
  0x39   :  { %2761 = vsyncadd [#allocation6], 4294934528  ;;  %v2308_v1 = vld [vmem:[#allocation5 + $0x4] ss:$16 sps:$4 sm:$0xff]   ;;  %v2312_v3 = vld [vmem:[#allocation5] ss:$16 sps:$4 sm:$0xff]  }
  0x3a   :  { %v2310_v2 = vld [vmem:[#allocation5 + $0x204] ss:$16 sps:$4 sm:$0xff]   ;;  %1253 = vmatprep.subr.bf16.mxu1 %v2308_v1  ;;  %v2313_v4 = vld [vmem:[#allocation5 + $0x200] ss:$16 sps:$4 sm:$0xff]   ;;  %v68_v47 = vld [vmem:[#allocation3 + $0x8] sm:$0xff]  ;;  %vm2012_vm0 = vcmask 7168  }
  0x3b   :  { %1294 = vmatprep.subr.bf16.mxu0 %v2310_v2  ;;  %v2314_v5 = vld [vmem:[#allocation5 + $0x24] ss:$16 sps:$4 sm:$0xff]   ;;  %1254 = vmatpush1.bf16.msra.mxu1 %v2312_v3  ;;  %v2318_v7 = vld [vmem:[#allocation5 + $0x20] ss:$16 sps:$4 sm:$0xff]   ;;  %v2848_v49 = vpack.c.bf16 %v68_v47, %v68_v47  ;;  %v70_v50 = vld [vmem:[#allocation3 + $0x18] sm:$0xff] }
  0x3c   :  { %1295 = vmatpush1.bf16.msra.mxu0 %v2313_v4  ;;  %v2316_v6 = vld [vmem:[#allocation5 + $0x224] ss:$16 sps:$4 sm:$0xff]   ;;  %1255 = vmatprep.subr.bf16.mxu1 %v2314_v5  ;;  %v2319_v8 = vld [vmem:[#allocation5 + $0x220] ss:$16 sps:$4 sm:$0xff]   ;;  %v2850_v53 = vpack.c.bf16 %v70_v50, %v70_v50  ;;  %v2461_v50 = vld [vmem:[#allocation5 + $0x128] ss:$16 sps:$4 sm:$0xff]  }
  0x3d   :  { %1296 = vmatprep.subr.bf16.mxu0 %v2316_v6  ;;  %v2320_v9 = vld [vmem:[#allocation5 + $0x44] ss:$16 sps:$4 sm:$0xff]   ;;  %v2324_v11 = vld [vmem:[#allocation5 + $0x40] ss:$16 sps:$4 sm:$0xff]   ;;  %1285 = vmatprep.mubr.bf16.mxu1 %v2848_v49 }
  0x3e   :  { %v2322_v10 = vld [vmem:[#allocation5 + $0x244] ss:$16 sps:$4 sm:$0xff]   ;;  %v2325_v12 = vld [vmem:[#allocation5 + $0x240] ss:$16 sps:$4 sm:$0xff]   ;;  %1326 = vmatprep.mubr.bf16.mxu0 %v2850_v53 }
  0x3f   :  { %1256 = vmatpush1.bf16.msra.mxu1 %v2318_v7  ;;  %v2326_v13 = vld [vmem:[#allocation5 + $0x64] ss:$16 sps:$4 sm:$0xff]   ;;  %v2330_v15 = vld [vmem:[#allocation5 + $0x60] ss:$16 sps:$4 sm:$0xff]  }
  0x40   :  { %1297 = vmatpush1.bf16.msra.mxu0 %v2319_v8  ;;  %1257 = vmatprep.subr.bf16.mxu1 %v2320_v9  ;;  %v2328_v14 = vld [vmem:[#allocation5 + $0x264] ss:$16 sps:$4 sm:$0xff]   ;;  %v2331_v16 = vld [vmem:[#allocation5 + $0x260] ss:$16 sps:$4 sm:$0xff]   ;;  %v2409_v8 = vld [vmem:[#allocation5 + $0xc] ss:$16 sps:$4 sm:$0xff]  }
  0x41   :  { %1298 = vmatprep.subr.bf16.mxu0 %v2322_v10  ;;  %v2332_v17 = vld [vmem:[#allocation5 + $0x84] ss:$16 sps:$4 sm:$0xff]   ;;  %v2336_v19 = vld [vmem:[#allocation5 + $0x80] ss:$16 sps:$4 sm:$0xff]  }
  0x42   :  { %v2334_v18 = vld [vmem:[#allocation5 + $0x284] ss:$16 sps:$4 sm:$0xff]   ;;  %v2337_v20 = vld [vmem:[#allocation5 + $0x280] ss:$16 sps:$4 sm:$0xff]  }
  0x43   :  { %1258 = vmatpush1.bf16.msra.mxu1 %v2324_v11  ;;  %v2338_v21 = vld [vmem:[#allocation5 + $0xa4] ss:$16 sps:$4 sm:$0xff]   ;;  %v2342_v23 = vld [vmem:[#allocation5 + $0xa0] ss:$16 sps:$4 sm:$0xff]   ;;  %v2407_v11 = vld [vmem:[#allocation5 + $0x8] ss:$16 sps:$4 sm:$0xff]  }
  0x44   :  { %1299 = vmatpush1.bf16.msra.mxu0 %v2325_v12  ;;  %1259 = vmatprep.subr.bf16.mxu1 %v2326_v13  ;;  %v2340_v22 = vld [vmem:[#allocation5 + $0x2a4] ss:$16 sps:$4 sm:$0xff]   ;;  %v2343_v24 = vld [vmem:[#allocation5 + $0x2a0] ss:$16 sps:$4 sm:$0xff]  }
  0x45   :  { %1300 = vmatprep.subr.bf16.mxu0 %v2328_v14  ;;  %v2344_v25 = vld [vmem:[#allocation5 + $0xc4] ss:$16 sps:$4 sm:$0xff]   ;;  %v2348_v27 = vld [vmem:[#allocation5 + $0xc0] ss:$16 sps:$4 sm:$0xff]   ;;  %v2415_v14 = vld [vmem:[#allocation5 + $0x2c] ss:$16 sps:$4 sm:$0xff]  }
  0x46   :  { %v2346_v26 = vld [vmem:[#allocation5 + $0x2c4] ss:$16 sps:$4 sm:$0xff]   ;;  %v2349_v28 = vld [vmem:[#allocation5 + $0x2c0] ss:$16 sps:$4 sm:$0xff]  }
  0x47   :  { %1260 = vmatpush1.bf16.msra.mxu1 %v2330_v15  ;;  %v2350_v29 = vld [vmem:[#allocation5 + $0xe4] ss:$16 sps:$4 sm:$0xff]   ;;  %v2354_v31 = vld [vmem:[#allocation5 + $0xe0] ss:$16 sps:$4 sm:$0xff]  }
  0x48   :  { %1301 = vmatpush1.bf16.msra.mxu0 %v2331_v16  ;;  %1261 = vmatprep.subr.bf16.mxu1 %v2332_v17  ;;  %v2352_v30 = vld [vmem:[#allocation5 + $0x2e4] ss:$16 sps:$4 sm:$0xff]   ;;  %v2355_v32 = vld [vmem:[#allocation5 + $0x2e0] ss:$16 sps:$4 sm:$0xff]   ;;  %v2413_v16 = vld [vmem:[#allocation5 + $0x28] ss:$16 sps:$4 sm:$0xff]  }
  0x49   :  { %1302 = vmatprep.subr.bf16.mxu0 %v2334_v18  ;;  %v2356_v33 = vld [vmem:[#allocation5 + $0x104] ss:$16 sps:$4 sm:$0xff]   ;;  %v2360_v35 = vld [vmem:[#allocation5 + $0x100] ss:$16 sps:$4 sm:$0xff]   ;;  %v2421_v18 = vld [vmem:[#allocation5 + $0x4c] ss:$16 sps:$4 sm:$0xff]  }
  0x4a   :  { %v2358_v34 = vld [vmem:[#allocation5 + $0x304] ss:$16 sps:$4 sm:$0xff]   ;;  %v2361_v36 = vld [vmem:[#allocation5 + $0x300] ss:$16 sps:$4 sm:$0xff]  }
  0x4b   :  { %1262 = vmatpush1.bf16.msra.mxu1 %v2336_v19  ;;  %v2362_v37 = vld [vmem:[#allocation5 + $0x124] ss:$16 sps:$4 sm:$0xff]   ;;  %v2366_v39 = vld [vmem:[#allocation5 + $0x120] ss:$16 sps:$4 sm:$0xff]  }
  0x4c   :  { %1303 = vmatpush1.bf16.msra.mxu0 %v2337_v20  ;;  %1263 = vmatprep.subr.bf16.mxu1 %v2338_v21  ;;  %v2364_v38 = vld [vmem:[#allocation5 + $0x324] ss:$16 sps:$4 sm:$0xff]   ;;  %v2367_v40 = vld [vmem:[#allocation5 + $0x320] ss:$16 sps:$4 sm:$0xff]   ;;  %v2419_v20 = vld [vmem:[#allocation5 + $0x48] ss:$16 sps:$4 sm:$0xff]  }
  0x4d   :  { %1304 = vmatprep.subr.bf16.mxu0 %v2340_v22  ;;  %v2368_v41 = vld [vmem:[#allocation5 + $0x144] ss:$16 sps:$4 sm:$0xff]   ;;  %v2372_v43 = vld [vmem:[#allocation5 + $0x140] ss:$16 sps:$4 sm:$0xff]   ;;  %v2427_v22 = vld [vmem:[#allocation5 + $0x6c] ss:$16 sps:$4 sm:$0xff]  }
  0x4e   :  { %v2370_v42 = vld [vmem:[#allocation5 + $0x344] ss:$16 sps:$4 sm:$0xff]   ;;  %v2373_v44 = vld [vmem:[#allocation5 + $0x340] ss:$16 sps:$4 sm:$0xff]  }
  0x4f   :  { %1264 = vmatpush1.bf16.msra.mxu1 %v2342_v23  ;;  %v2374_v45 = vld [vmem:[#allocation5 + $0x164] ss:$16 sps:$4 sm:$0xff]   ;;  %v2378_v48 = vld [vmem:[#allocation5 + $0x160] ss:$16 sps:$4 sm:$0xff]  }
  0x50   :  { %1305 = vmatpush1.bf16.msra.mxu0 %v2343_v24  ;;  %1265 = vmatprep.subr.bf16.mxu1 %v2344_v25  ;;  %v2376_v46 = vld [vmem:[#allocation5 + $0x364] ss:$16 sps:$4 sm:$0xff]   ;;  %v2379_v51 = vld [vmem:[#allocation5 + $0x360] ss:$16 sps:$4 sm:$0xff]   ;;  %v2425_v24 = vld [vmem:[#allocation5 + $0x68] ss:$16 sps:$4 sm:$0xff]  }
  0x51   :  { %1306 = vmatprep.subr.bf16.mxu0 %v2346_v26  ;;  %v2380_v52 = vld [vmem:[#allocation5 + $0x184] ss:$16 sps:$4 sm:$0xff]   ;;  %v2384_v55 = vld [vmem:[#allocation5 + $0x180] ss:$16 sps:$4 sm:$0xff]   ;;  %v2433_v26 = vld [vmem:[#allocation5 + $0x8c] ss:$16 sps:$4 sm:$0xff]  }
  0x52   :  { %v2382_v54 = vld [vmem:[#allocation5 + $0x384] ss:$16 sps:$4 sm:$0xff]   ;;  %v2385_v56 = vld [vmem:[#allocation5 + $0x380] ss:$16 sps:$4 sm:$0xff]  }
  0x53   :  { %1266 = vmatpush1.bf16.msra.mxu1 %v2348_v27  ;;  %v2386_v57 = vld [vmem:[#allocation5 + $0x1a4] ss:$16 sps:$4 sm:$0xff]   ;;  %v2390_v59 = vld [vmem:[#allocation5 + $0x1a0] ss:$16 sps:$4 sm:$0xff]  }
  0x54   :  { %1307 = vmatpush1.bf16.msra.mxu0 %v2349_v28  ;;  %1267 = vmatprep.subr.bf16.mxu1 %v2350_v29  ;;  %v2388_v58 = vld [vmem:[#allocation5 + $0x3a4] ss:$16 sps:$4 sm:$0xff]   ;;  %v2391_v60 = vld [vmem:[#allocation5 + $0x3a0] ss:$16 sps:$4 sm:$0xff]   ;;  %v2431_v28 = vld [vmem:[#allocation5 + $0x88] ss:$16 sps:$4 sm:$0xff]  }
  0x55   :  { %1308 = vmatprep.subr.bf16.mxu0 %v2352_v30  ;;  %v2392_v61 = vld [vmem:[#allocation5 + $0x1c4] ss:$16 sps:$4 sm:$0xff]   ;;  %v2396_v63 = vld [vmem:[#allocation5 + $0x1c0] ss:$16 sps:$4 sm:$0xff]   ;;  %v2439_v30 = vld [vmem:[#allocation5 + $0xac] ss:$16 sps:$4 sm:$0xff]  }
  0x56   :  { %v2394_v62 = vld [vmem:[#allocation5 + $0x3c4] ss:$16 sps:$4 sm:$0xff]   ;;  %v2397_v0 = vld [vmem:[#allocation5 + $0x3c0] ss:$16 sps:$4 sm:$0xff]  }
  0x57   :  { %1268 = vmatpush1.bf16.msra.mxu1 %v2354_v31  ;;  %v2398_v1 = vld [vmem:[#allocation5 + $0x1e4] ss:$16 sps:$4 sm:$0xff]   ;;  %v2402_v3 = vld [vmem:[#allocation5 + $0x1e0] ss:$16 sps:$4 sm:$0xff]  }
  0x58   :  { %1309 = vmatpush1.bf16.msra.mxu0 %v2355_v32  ;;  %1269 = vmatprep.subr.bf16.mxu1 %v2356_v33  ;;  %v2400_v2 = vld [vmem:[#allocation5 + $0x3e4] ss:$16 sps:$4 sm:$0xff]   ;;  %v2403_v4 = vld [vmem:[#allocation5 + $0x3e0] ss:$16 sps:$4 sm:$0xff]   ;;  %v2437_v32 = vld [vmem:[#allocation5 + $0xa8] ss:$16 sps:$4 sm:$0xff]  }
  0x59   :  { %1310 = vmatprep.subr.bf16.mxu0 %v2358_v34  ;;  %v67_v5 = vld [vmem:[#allocation3] sm:$0xff]  ;;  %v69_v7 = vld [vmem:[#allocation3 + $0x10] sm:$0xff]  ;;  %v2445_v34 = vld [vmem:[#allocation5 + $0xcc] ss:$16 sps:$4 sm:$0xff]  }
  0x5a   :  { %v2406_v6 = vld [vmem:[#allocation5 + $0x404] ss:$16 sps:$4 sm:$0xff]   ;;  %v2854_v9 = vpack.c.bf16 %v67_v5, %v67_v5  ;;  %v2404_v10 = vld [vmem:[#allocation5 + $0x400] ss:$16 sps:$4 sm:$0xff]   ;;  %v2856_v12 = vpack.c.bf16 %v69_v7, %v69_v7  ;;  %v2493_v5 = vld [vmem:[#allocation5 + $0x1cc] ss:$16 sps:$4 sm:$0xff]  }
  0x5b   :  { %1270 = vmatpush1.bf16.msra.mxu1 %v2360_v35  ;;  %v2412_v13 = vld [vmem:[#allocation5 + $0x424] ss:$16 sps:$4 sm:$0xff]   ;;  %v2410_v15 = vld [vmem:[#allocation5 + $0x420] ss:$16 sps:$4 sm:$0xff]   ;;  %v72_v35 = vld [vmem:[#allocation3 + $0x28] sm:$0xff] }
  0x5c   :  { %1311 = vmatpush1.bf16.msra.mxu0 %v2361_v36  ;;  %1271 = vmatprep.subr.bf16.mxu1 %v2362_v37  ;;  %v2418_v17 = vld [vmem:[#allocation5 + $0x444] ss:$16 sps:$4 sm:$0xff]   ;;  %v2416_v19 = vld [vmem:[#allocation5 + $0x440] ss:$16 sps:$4 sm:$0xff]   ;;  %v2861_v36 = vpack.c.bf16 %v72_v35, %v72_v35  ;;  %v2491_v7 = vld [vmem:[#allocation5 + $0x1c8] ss:$16 sps:$4 sm:$0xff]  }
  0x5d   :  { %1312 = vmatprep.subr.bf16.mxu0 %v2364_v38  ;;  %v2424_v21 = vld [vmem:[#allocation5 + $0x464] ss:$16 sps:$4 sm:$0xff]   ;;  %v2422_v23 = vld [vmem:[#allocation5 + $0x460] ss:$16 sps:$4 sm:$0xff]   ;;  %v2443_v38 = vld [vmem:[#allocation5 + $0xc8] ss:$16 sps:$4 sm:$0xff]  }
  0x5e   :  { %v2430_v25 = vld [vmem:[#allocation5 + $0x484] ss:$16 sps:$4 sm:$0xff]   ;;  %v2428_v27 = vld [vmem:[#allocation5 + $0x480] ss:$16 sps:$4 sm:$0xff]  }
  0x5f   :  { %1272 = vmatpush1.bf16.msra.mxu1 %v2366_v39  ;;  %v2436_v29 = vld [vmem:[#allocation5 + $0x4a4] ss:$16 sps:$4 sm:$0xff]   ;;  %v2434_v31 = vld [vmem:[#allocation5 + $0x4a0] ss:$16 sps:$4 sm:$0xff]  }
  0x60   :  { %1313 = vmatpush1.bf16.msra.mxu0 %v2367_v40  ;;  %1273 = vmatprep.subr.bf16.mxu1 %v2368_v41  ;;  %v2442_v33 = vld [vmem:[#allocation5 + $0x4c4] ss:$16 sps:$4 sm:$0xff]   ;;  %v2440_v37 = vld [vmem:[#allocation5 + $0x4c0] ss:$16 sps:$4 sm:$0xff]   ;;  %v2451_v40 = vld [vmem:[#allocation5 + $0xec] ss:$16 sps:$4 sm:$0xff]  }
  0x61   :  { %1314 = vmatprep.subr.bf16.mxu0 %v2370_v42  ;;  %v2448_v39 = vld [vmem:[#allocation5 + $0x4e4] ss:$16 sps:$4 sm:$0xff]   ;;  %v2446_v41 = vld [vmem:[#allocation5 + $0x4e0] ss:$16 sps:$4 sm:$0xff]   ;;  %v2449_v42 = vld [vmem:[#allocation5 + $0xe8] ss:$16 sps:$4 sm:$0xff]  }
  0x62   :  { %v2460_v47 = vld [vmem:[#allocation5 + $0x524] ss:$16 sps:$4 sm:$0xff]  }
  0x63   :  { %1274 = vmatpush1.bf16.msra.mxu1 %v2372_v43  ;;  %v2454_v43 = vld [vmem:[#allocation5 + $0x504] ss:$16 sps:$4 sm:$0xff]  }
  0x64   :  { %1315 = vmatpush1.bf16.msra.mxu0 %v2373_v44  ;;  %1275 = vmatprep.subr.bf16.mxu1 %v2374_v45  ;;  %v2457_v44 = vld [vmem:[#allocation5 + $0x10c] ss:$16 sps:$4 sm:$0xff]   ;;  %v2452_v45 = vld [vmem:[#allocation5 + $0x500] ss:$16 sps:$4 sm:$0xff]  }
  0x65   :  { %1316 = vmatprep.subr.bf16.mxu0 %v2376_v46  ;;  %v2455_v46 = vld [vmem:[#allocation5 + $0x108] ss:$16 sps:$4 sm:$0xff]   ;;  %v2604_v35 = vld [vmem:[#allocation7 + $0x24] ss:$8 sps:$4 sm:$0xff]  }
  0x67   :  { %1276 = vmatpush1.bf16.msra.mxu1 %v2378_v48  ;;  %v2463_v48 = vld [vmem:[#allocation5 + $0x12c] ss:$16 sps:$4 sm:$0xff]  }
  0x68   :  { %1317 = vmatpush1.bf16.msra.mxu0 %v2379_v51  ;;  %1277 = vmatprep.subr.bf16.mxu1 %v2380_v52  ;;  %v2466_v51 = vld [vmem:[#allocation5 + $0x544] ss:$16 sps:$4 sm:$0xff]   ;;  %v2469_v52 = vld [vmem:[#allocation5 + $0x14c] ss:$16 sps:$4 sm:$0xff]  }
  0x69   :  { %1318 = vmatprep.subr.bf16.mxu0 %v2382_v54  ;;  %v2464_v54 = vld [vmem:[#allocation5 + $0x540] ss:$16 sps:$4 sm:$0xff]  }
  0x6b   :  { %1278 = vmatpush1.bf16.msra.mxu1 %v2384_v55  ;;  %v2467_v55 = vld [vmem:[#allocation5 + $0x148] ss:$16 sps:$4 sm:$0xff]  }
  0x6c   :  { %1319 = vmatpush1.bf16.msra.mxu0 %v2385_v56  ;;  %1279 = vmatprep.subr.bf16.mxu1 %v2386_v57  ;;  %v2472_v56 = vld [vmem:[#allocation5 + $0x564] ss:$16 sps:$4 sm:$0xff]   ;;  %v2475_v57 = vld [vmem:[#allocation5 + $0x16c] ss:$16 sps:$4 sm:$0xff]  }
  0x6d   :  { %1320 = vmatprep.subr.bf16.mxu0 %v2388_v58  ;;  %v2470_v58 = vld [vmem:[#allocation5 + $0x560] ss:$16 sps:$4 sm:$0xff]  }
  0x6f   :  { %1280 = vmatpush1.bf16.msra.mxu1 %v2390_v59  ;;  %v2473_v59 = vld [vmem:[#allocation5 + $0x168] ss:$16 sps:$4 sm:$0xff]  }
  0x70   :  { %1321 = vmatpush1.bf16.msra.mxu0 %v2391_v60  ;;  %1281 = vmatprep.subr.bf16.mxu1 %v2392_v61  ;;  %v2478_v60 = vld [vmem:[#allocation5 + $0x584] ss:$16 sps:$4 sm:$0xff]   ;;  %v2481_v61 = vld [vmem:[#allocation5 + $0x18c] ss:$16 sps:$4 sm:$0xff]  }
  0x71   :  { %1322 = vmatprep.subr.bf16.mxu0 %v2394_v62  ;;  %v2476_v62 = vld [vmem:[#allocation5 + $0x580] ss:$16 sps:$4 sm:$0xff]  }
  0x73   :  { %1282 = vmatpush1.bf16.msra.mxu1 %v2396_v63  ;;  %v2479_v63 = vld [vmem:[#allocation5 + $0x188] ss:$16 sps:$4 sm:$0xff]  }
  0x74   :  { %1323 = vmatpush1.bf16.msra.mxu0 %v2397_v0  ;;  %1283 = vmatprep.subr.bf16.mxu1 %v2398_v1  ;;  %v2484_v0 = vld [vmem:[#allocation5 + $0x5a4] ss:$16 sps:$4 sm:$0xff]   ;;  %v2487_v1 = vld [vmem:[#allocation5 + $0x1ac] ss:$16 sps:$4 sm:$0xff]  }
  0x75   :  { %1324 = vmatprep.subr.bf16.mxu0 %v2400_v2  ;;  %v2482_v2 = vld [vmem:[#allocation5 + $0x5a0] ss:$16 sps:$4 sm:$0xff]  }
  0x77   :  { %1284 = vmatpush1.bf16.msra.mxu1 %v2402_v3  ;;  %v2485_v3 = vld [vmem:[#allocation5 + $0x1a8] ss:$16 sps:$4 sm:$0xff]  }
  0x78   :  { %1325 = vmatpush1.bf16.msra.mxu0 %v2403_v4  ;;  %1376 = vmatprep.subr.bf16.mxu1 %v2409_v8  ;;  %v2490_v4 = vld [vmem:[#allocation5 + $0x5c4] ss:$16 sps:$4 sm:$0xff]  }
  0x79   :  { %1335 = vmatprep.subr.bf16.mxu0 %v2406_v6  ;;  %v2488_v6 = vld [vmem:[#allocation5 + $0x5c0] ss:$16 sps:$4 sm:$0xff]   ;;  %v2496_v8 = vld [vmem:[#allocation5 + $0x5e4] ss:$16 sps:$4 sm:$0xff]  }
  0x7a   :  { %1286 = vmatmul.mubr.bf16.vlgmr.msra.gmra.mrb[0].mxu1 %v2854_v9 }
  0x7b   :  { %1327 = vmatmul.mubr.bf16.vlgmr.msra.gmra.mrb[0].mxu0 %v2856_v12  ;;  %1377 = vmatpush1.bf16.msra.mxu1 %v2407_v11  ;;  %v2494_v11 = vld [vmem:[#allocation5 + $0x5e0] ss:$16 sps:$4 sm:$0xff]  }
  0x7c   :  { %1336 = vmatpush1.bf16.msra.mxu0 %v2404_v10  ;;  %1378 = vmatprep.subr.bf16.mxu1 %v2415_v14  ;;  %v2499_v10 = vld [vmem:[#allocation5 + $0x1ec] ss:$16 sps:$4 sm:$0xff]   ;;  %v71_v14 = vld [vmem:[#allocation3 + $0x20] sm:$0xff] }
  0x7d   :  { %1337 = vmatprep.subr.bf16.mxu0 %v2412_v13  ;;  %1408 = vmatprep.mubr.bf16.mxu1 %v2848_v49  ;;  %v2458_v49 = vld [vmem:[#allocation5 + $0x520] ss:$16 sps:$4 sm:$0xff]   ;;  %v2497_v13 = vld [vmem:[#allocation5 + $0x1e8] ss:$16 sps:$4 sm:$0xff]  }
  0x7e   :  { %1367 = vmatprep.mubr.bf16.mxu0 %v2861_v36 }
  0x7f   :  { %1379 = vmatpush1.bf16.msra.mxu1 %v2413_v16  ;;  %v2864_v16 = vpack.c.bf16 %v71_v14, %v71_v14  ;;  %v2629_v14 = vld [vmem:[#allocation7 + $0xb0] ss:$8 sps:$4 sm:$0xff]  }
  0x80   :  { %1338 = vmatpush1.bf16.msra.mxu0 %v2410_v15  ;;  %1380 = vmatprep.subr.bf16.mxu1 %v2421_v18  ;;  %v2502_v15 = vld [vmem:[#allocation5 + $0x20c] ss:$16 sps:$4 sm:$0xff]  }
  0x81   :  { %1339 = vmatprep.subr.bf16.mxu0 %v2418_v17  ;;  %v2500_v17 = vld [vmem:[#allocation5 + $0x208] ss:$16 sps:$4 sm:$0xff]   ;;  %v2505_v18 = vld [vmem:[#allocation5 + $0x22c] ss:$16 sps:$4 sm:$0xff]  }
  0x83   :  { %1381 = vmatpush1.bf16.msra.mxu1 %v2419_v20  ;;  %v2508_v20 = vld [vmem:[#allocation5 + $0x24c] ss:$16 sps:$4 sm:$0xff]  }
  0x84   :  { %1340 = vmatpush1.bf16.msra.mxu0 %v2416_v19  ;;  %1382 = vmatprep.subr.bf16.mxu1 %v2427_v22  ;;  %v2503_v19 = vld [vmem:[#allocation5 + $0x228] ss:$16 sps:$4 sm:$0xff]   ;;  %v2511_v22 = vld [vmem:[#allocation5 + $0x26c] ss:$16 sps:$4 sm:$0xff]  }
  0x85   :  { %1341 = vmatprep.subr.bf16.mxu0 %v2424_v21  ;;  %v2506_v21 = vld [vmem:[#allocation5 + $0x248] ss:$16 sps:$4 sm:$0xff]  }
  0x87   :  { %1383 = vmatpush1.bf16.msra.mxu1 %v2425_v24  ;;  %v2514_v24 = vld [vmem:[#allocation5 + $0x28c] ss:$16 sps:$4 sm:$0xff]  }
  0x88   :  { %1342 = vmatpush1.bf16.msra.mxu0 %v2422_v23  ;;  %1384 = vmatprep.subr.bf16.mxu1 %v2433_v26  ;;  %v2509_v23 = vld [vmem:[#allocation5 + $0x268] ss:$16 sps:$4 sm:$0xff]   ;;  %v2517_v26 = vld [vmem:[#allocation5 + $0x2ac] ss:$16 sps:$4 sm:$0xff]  }
  0x89   :  { %1343 = vmatprep.subr.bf16.mxu0 %v2430_v25  ;;  %v2512_v25 = vld [vmem:[#allocation5 + $0x288] ss:$16 sps:$4 sm:$0xff]  }
  0x8b   :  { %1385 = vmatpush1.bf16.msra.mxu1 %v2431_v28  ;;  %v2520_v28 = vld [vmem:[#allocation5 + $0x2cc] ss:$16 sps:$4 sm:$0xff]  }
  0x8c   :  { %1344 = vmatpush1.bf16.msra.mxu0 %v2428_v27  ;;  %1386 = vmatprep.subr.bf16.mxu1 %v2439_v30  ;;  %v2515_v27 = vld [vmem:[#allocation5 + $0x2a8] ss:$16 sps:$4 sm:$0xff]   ;;  %v2598_v30 = vld [vmem:[#allocation7 + $0x4] ss:$8 sps:$4 sm:$0xff]  }
  0x8d   :  { %1345 = vmatprep.subr.bf16.mxu0 %v2436_v29  ;;  %v2596_v29 = vld [vmem:[#allocation7] ss:$8 sps:$4 sm:$0xff]  }
  0x8f   :  { %1387 = vmatpush1.bf16.msra.mxu1 %v2437_v32  ;;  %v2521_v32 = vld [vmem:[#allocation5 + $0x2e8] ss:$16 sps:$4 sm:$0xff]  }
  0x90   :  { %1346 = vmatpush1.bf16.msra.mxu0 %v2434_v31  ;;  %1388 = vmatprep.subr.bf16.mxu1 %v2445_v34  ;;  %v2601_v31 = vld [vmem:[#allocation7 + $0x14] ss:$8 sps:$4 sm:$0xff]  }
  0x91   :  { %1347 = vmatprep.subr.bf16.mxu0 %v2442_v33  ;;  %v2599_v33 = vld [vmem:[#allocation7 + $0x10] ss:$8 sps:$4 sm:$0xff]   ;;  %v2526_v34 = vld [vmem:[#allocation5 + $0x30c] ss:$16 sps:$4 sm:$0xff]  }
  0x93   :  { %1389 = vmatpush1.bf16.msra.mxu1 %v2443_v38  ;;  %v2602_v38 = vld [vmem:[#allocation7 + $0x20] ss:$8 sps:$4 sm:$0xff]  }
  0x94   :  { %1348 = vmatpush1.bf16.msra.mxu0 %v2440_v37  ;;  %1390 = vmatprep.subr.bf16.mxu1 %v2451_v40  ;;  %v2524_v37 = vld [vmem:[#allocation5 + $0x308] ss:$16 sps:$4 sm:$0xff]   ;;  %v2607_v40 = vld [vmem:[#allocation7 + $0x34] ss:$8 sps:$4 sm:$0xff]  }
  0x95   :  { %1349 = vmatprep.subr.bf16.mxu0 %v2448_v39  ;;  %v2529_v39 = vld [vmem:[#allocation5 + $0x32c] ss:$16 sps:$4 sm:$0xff]  }
  0x97   :  { %1391 = vmatpush1.bf16.msra.mxu1 %v2449_v42  ;;  %v2605_v42 = vld [vmem:[#allocation7 + $0x30] ss:$8 sps:$4 sm:$0xff]  }
  0x98   :  { %1350 = vmatpush1.bf16.msra.mxu0 %v2446_v41  ;;  %1392 = vmatprep.subr.bf16.mxu1 %v2457_v44  ;;  %v2527_v41 = vld [vmem:[#allocation5 + $0x328] ss:$16 sps:$4 sm:$0xff]   ;;  %v2610_v44 = vld [vmem:[#allocation7 + $0x44] ss:$8 sps:$4 sm:$0xff]  }
  0x99   :  { %1351 = vmatprep.subr.bf16.mxu0 %v2454_v43  ;;  %v2532_v43 = vld [vmem:[#allocation5 + $0x34c] ss:$16 sps:$4 sm:$0xff]  }
  0x9b   :  { %1393 = vmatpush1.bf16.msra.mxu1 %v2455_v46  ;;  %v2608_v46 = vld [vmem:[#allocation7 + $0x40] ss:$8 sps:$4 sm:$0xff]  }
  0x9c   :  { %1352 = vmatpush1.bf16.msra.mxu0 %v2452_v45  ;;  %1394 = vmatprep.subr.bf16.mxu1 %v2463_v48  ;;  %v2530_v45 = vld [vmem:[#allocation5 + $0x348] ss:$16 sps:$4 sm:$0xff]   ;;  %v2613_v48 = vld [vmem:[#allocation7 + $0x54] ss:$8 sps:$4 sm:$0xff]  }
  0x9d   :  { %1353 = vmatprep.subr.bf16.mxu0 %v2460_v47  ;;  %v2535_v47 = vld [vmem:[#allocation5 + $0x36c] ss:$16 sps:$4 sm:$0xff]  }
  0x9f   :  { %1395 = vmatpush1.bf16.msra.mxu1 %v2461_v50  ;;  %v2611_v50 = vld [vmem:[#allocation7 + $0x50] ss:$8 sps:$4 sm:$0xff]  }
  0xa0   :  { %1354 = vmatpush1.bf16.msra.mxu0 %v2458_v49  ;;  %1396 = vmatprep.subr.bf16.mxu1 %v2469_v52  ;;  %v2533_v49 = vld [vmem:[#allocation5 + $0x368] ss:$16 sps:$4 sm:$0xff]   ;;  %v2616_v52 = vld [vmem:[#allocation7 + $0x64] ss:$8 sps:$4 sm:$0xff]  }
  0xa1   :  { %1355 = vmatprep.subr.bf16.mxu0 %v2466_v51  ;;  %v2538_v51 = vld [vmem:[#allocation5 + $0x38c] ss:$16 sps:$4 sm:$0xff]  }
  0xa3   :  { %1397 = vmatpush1.bf16.msra.mxu1 %v2467_v55  ;;  %v2614_v55 = vld [vmem:[#allocation7 + $0x60] ss:$8 sps:$4 sm:$0xff]  }
  0xa4   :  { %1356 = vmatpush1.bf16.msra.mxu0 %v2464_v54  ;;  %1398 = vmatprep.subr.bf16.mxu1 %v2475_v57  ;;  %v2536_v54 = vld [vmem:[#allocation5 + $0x388] ss:$16 sps:$4 sm:$0xff]   ;;  %v2619_v57 = vld [vmem:[#allocation7 + $0x74] ss:$8 sps:$4 sm:$0xff]  }
  0xa5   :  { %1357 = vmatprep.subr.bf16.mxu0 %v2472_v56  ;;  %v2541_v56 = vld [vmem:[#allocation5 + $0x3ac] ss:$16 sps:$4 sm:$0xff]  }
  0xa7   :  { %1399 = vmatpush1.bf16.msra.mxu1 %v2473_v59  ;;  %v2617_v59 = vld [vmem:[#allocation7 + $0x70] ss:$8 sps:$4 sm:$0xff]  }
  0xa8   :  { %1358 = vmatpush1.bf16.msra.mxu0 %v2470_v58  ;;  %1400 = vmatprep.subr.bf16.mxu1 %v2481_v61  ;;  %v2539_v58 = vld [vmem:[#allocation5 + $0x3a8] ss:$16 sps:$4 sm:$0xff]   ;;  %v2622_v61 = vld [vmem:[#allocation7 + $0x84] ss:$8 sps:$4 sm:$0xff]  }
  0xa9   :  { %1359 = vmatprep.subr.bf16.mxu0 %v2478_v60  ;;  %v2544_v60 = vld [vmem:[#allocation5 + $0x3cc] ss:$16 sps:$4 sm:$0xff]  }
  0xab   :  { %1401 = vmatpush1.bf16.msra.mxu1 %v2479_v63  ;;  %v2620_v63 = vld [vmem:[#allocation7 + $0x80] ss:$8 sps:$4 sm:$0xff]  }
  0xac   :  { %1360 = vmatpush1.bf16.msra.mxu0 %v2476_v62  ;;  %1402 = vmatprep.subr.bf16.mxu1 %v2487_v1  ;;  %v2542_v62 = vld [vmem:[#allocation5 + $0x3c8] ss:$16 sps:$4 sm:$0xff]   ;;  %v2625_v1 = vld [vmem:[#allocation7 + $0x94] ss:$8 sps:$4 sm:$0xff]  }
  0xad   :  { %1361 = vmatprep.subr.bf16.mxu0 %v2484_v0  ;;  %v2547_v0 = vld [vmem:[#allocation5 + $0x3ec] ss:$16 sps:$4 sm:$0xff]  }
  0xaf   :  { %1403 = vmatpush1.bf16.msra.mxu1 %v2485_v3  ;;  %v2623_v3 = vld [vmem:[#allocation7 + $0x90] ss:$8 sps:$4 sm:$0xff]  }
  0xb0   :  { %1362 = vmatpush1.bf16.msra.mxu0 %v2482_v2  ;;  %1404 = vmatprep.subr.bf16.mxu1 %v2493_v5  ;;  %v2545_v2 = vld [vmem:[#allocation5 + $0x3e8] ss:$16 sps:$4 sm:$0xff]   ;;  %v2628_v5 = vld [vmem:[#allocation7 + $0xa4] ss:$8 sps:$4 sm:$0xff]  }
  0xb1   :  { %1363 = vmatprep.subr.bf16.mxu0 %v2490_v4  ;;  %v2550_v4 = vld [vmem:[#allocation5 + $0x40c] ss:$16 sps:$4 sm:$0xff]  }
  0xb3   :  { %1405 = vmatpush1.bf16.msra.mxu1 %v2491_v7  ;;  %v2553_v7 = vld [vmem:[#allocation5 + $0x42c] ss:$16 sps:$4 sm:$0xff]  }
  0xb4   :  { %1364 = vmatpush1.bf16.msra.mxu0 %v2488_v6  ;;  %1406 = vmatprep.subr.bf16.mxu1 %v2499_v10  ;;  %v2548_v6 = vld [vmem:[#allocation5 + $0x408] ss:$16 sps:$4 sm:$0xff]   ;;  %v2631_v10 = vld [vmem:[#allocation7 + $0xb4] ss:$8 sps:$4 sm:$0xff]  }
  0xb5   :  { %1365 = vmatprep.subr.bf16.mxu0 %v2496_v8  ;;  %v2626_v8 = vld [vmem:[#allocation7 + $0xa0] ss:$8 sps:$4 sm:$0xff]  }
  0xb7   :  { %1407 = vmatpush1.bf16.msra.mxu1 %v2497_v13  ;;  %v2556_v13 = vld [vmem:[#allocation5 + $0x44c] ss:$16 sps:$4 sm:$0xff]  }
  0xb8   :  { %1366 = vmatpush1.bf16.msra.mxu0 %v2494_v11  ;;  %1417 = vmatprep.subr.bf16.mxu1 %v2502_v15  ;;  %v2551_v11 = vld [vmem:[#allocation5 + $0x428] ss:$16 sps:$4 sm:$0xff]   ;;  %v2634_v15 = vld [vmem:[#allocation7 + $0xc4] ss:$8 sps:$4 sm:$0xff]  }
  0xb9   :  { %1903 = vmatprep.subr.bf16.mxu0 %v2598_v30  ;;  %v2569_v30 = vld [vmem:[#allocation5 + $0x4e8] ss:$16 sps:$4 sm:$0xff]  }
  0xba   :  { %1409 = vmatmul.mubr.bf16.vlgmr.msra.gmra.mrb[4].mxu1 %v2854_v9  ;;  %v2518_v9 = vld [vmem:[#allocation5 + $0x2c8] ss:$16 sps:$4 sm:$0xff]  }
  0xbb   :  { %1368 = vmatmul.mubr.bf16.vlgmr.msra.gmra.mrb[0].mxu0 %v2864_v16  ;;  %1418 = vmatpush1.bf16.msra.mxu1 %v2500_v17  ;;  %v2554_v17 = vld [vmem:[#allocation5 + $0x448] ss:$16 sps:$4 sm:$0xff]  }
  0xbc   :  { %1449 = vmatprep.mubr.bf16.mxu1 %v2850_v53  ;;  %1419 = vmatprep.subr.bf16.mxu1 %v2505_v18  ;;  %v2523_v53 = vld [vmem:[#allocation5 + $0x2ec] ss:$16 sps:$4 sm:$0xff]  }
  0xbd   :  { %1904 = vmatpush1.bf16.msra.mxu0 %v2596_v29  ;;  %v2559_v18 = vld [vmem:[#allocation5 + $0x46c] ss:$16 sps:$4 sm:$0xff]   ;;  %v2641_v29 = vld [vmem:[#allocation7 + $0xf0] ss:$8 sps:$4 sm:$0xff]  }
  0xbe   :  { %1905 = vmatprep.subr.bf16.mxu0 %v2601_v31  ;;  %v2574_v31 = vld [vmem:[#allocation5 + $0x50c] ss:$16 sps:$4 sm:$0xff]  }
  0xbf   :  { %1420 = vmatpush1.bf16.msra.mxu1 %v2503_v19  ;;  %v2632_v19 = vld [vmem:[#allocation7 + $0xc0] ss:$8 sps:$4 sm:$0xff]  }
  0xc0   :  { %1421 = vmatprep.subr.bf16.mxu1 %v2508_v20  ;;  %v2637_v20 = vld [vmem:[#allocation7 + $0xd4] ss:$8 sps:$4 sm:$0xff]  }
  0xc1   :  { %1906 = vmatpush1.bf16.msra.mxu0 %v2599_v33  ;;  %v2572_v33 = vld [vmem:[#allocation5 + $0x508] ss:$16 sps:$4 sm:$0xff]  }
  0xc2   :  { %1907 = vmatprep.subr.bf16.mxu0 %v2604_v35  ;;  %v2575_v35 = vld [vmem:[#allocation5 + $0x528] ss:$16 sps:$4 sm:$0xff]  }
  0xc3   :  { %1422 = vmatpush1.bf16.msra.mxu1 %v2506_v21  ;;  %v2562_v21 = vld [vmem:[#allocation5 + $0x48c] ss:$16 sps:$4 sm:$0xff]  }
  0xc4   :  { %1423 = vmatprep.subr.bf16.mxu1 %v2511_v22  ;;  %v2560_v22 = vld [vmem:[#allocation5 + $0x488] ss:$16 sps:$4 sm:$0xff]  }
  0xc5   :  { %1908 = vmatpush1.bf16.msra.mxu0 %v2602_v38  ;;  %v2578_v38 = vld [vmem:[#allocation5 + $0x548] ss:$16 sps:$4 sm:$0xff]  }
  0xc6   :  { %1909 = vmatprep.subr.bf16.mxu0 %v2607_v40  ;;  %v2581_v40 = vld [vmem:[#allocation5 + $0x568] ss:$16 sps:$4 sm:$0xff]  }
  0xc7   :  { %1424 = vmatpush1.bf16.msra.mxu1 %v2509_v23  ;;  %v2565_v23 = vld [vmem:[#allocation5 + $0x4ac] ss:$16 sps:$4 sm:$0xff]  }
  0xc8   :  { %1425 = vmatprep.subr.bf16.mxu1 %v2514_v24  ;;  %v2563_v24 = vld [vmem:[#allocation5 + $0x4a8] ss:$16 sps:$4 sm:$0xff]  }
  0xc9   :  { %1910 = vmatpush1.bf16.msra.mxu0 %v2605_v42  ;;  %v2584_v42 = vld [vmem:[#allocation5 + $0x588] ss:$16 sps:$4 sm:$0xff]  }
  0xca   :  { %1911 = vmatprep.subr.bf16.mxu0 %v2610_v44  ;;  %v2587_v44 = vld [vmem:[#allocation5 + $0x5a8] ss:$16 sps:$4 sm:$0xff]  }
  0xcb   :  { %1426 = vmatpush1.bf16.msra.mxu1 %v2512_v25  ;;  %v2568_v25 = vld [vmem:[#allocation5 + $0x4cc] ss:$16 sps:$4 sm:$0xff]  }
  0xcc   :  { %1427 = vmatprep.subr.bf16.mxu1 %v2517_v26  ;;  %v2640_v26 = vld [vmem:[#allocation7 + $0xe4] ss:$8 sps:$4 sm:$0xff]  }
  0xcd   :  { %1912 = vmatpush1.bf16.msra.mxu0 %v2608_v46  ;;  %v2590_v46 = vld [vmem:[#allocation5 + $0x5c8] ss:$16 sps:$4 sm:$0xff]  }
  0xce   :  { %1913 = vmatprep.subr.bf16.mxu0 %v2613_v48  ;;  %v2593_v48 = vld [vmem:[#allocation5 + $0x5e8] ss:$16 sps:$4 sm:$0xff]  }
  0xcf   :  { %1428 = vmatpush1.bf16.msra.mxu1 %v2515_v27  ;;  %v2638_v27 = vld [vmem:[#allocation7 + $0xe0] ss:$8 sps:$4 sm:$0xff]  }
  0xd0   :  { %1429 = vmatprep.subr.bf16.mxu1 %v2520_v28  ;;  %v2566_v28 = vld [vmem:[#allocation5 + $0x4c8] ss:$16 sps:$4 sm:$0xff]  }
  0xd1   :  { %1914 = vmatpush1.bf16.msra.mxu0 %v2611_v50 }
  0xd2   :  { %1915 = vmatprep.subr.bf16.mxu0 %v2616_v52 }
  0xd3   :  { %1430 = vmatpush1.bf16.msra.mxu1 %v2518_v9  ;;  %v2571_v9 = vld [vmem:[#allocation5 + $0x4ec] ss:$16 sps:$4 sm:$0xff]  }
  0xd4   :  { %1431 = vmatprep.subr.bf16.mxu1 %v2523_v53  ;;  %v2643_v53 = vld [vmem:[#allocation7 + $0xf4] ss:$8 sps:$4 sm:$0xff]  }
  0xd5   :  { %1916 = vmatpush1.bf16.msra.mxu0 %v2614_v55 }
  0xd6   :  { %1917 = vmatprep.subr.bf16.mxu0 %v2619_v57  ;;  %v2880_v57 = vld [vmem:[%s2908_s2] sm:$0xf] }
  0xd7   :  { %1432 = vmatpush1.bf16.msra.mxu1 %v2521_v32  ;;  %v2646_v32 = vld [vmem:[#allocation7 + $0x104] ss:$8 sps:$4 sm:$0xff]  }
  0xd8   :  { %1433 = vmatprep.subr.bf16.mxu1 %v2526_v34  ;;  %v2577_v34 = vld [vmem:[#allocation5 + $0x52c] ss:$16 sps:$4 sm:$0xff]  }
  0xd9   :  { %1918 = vmatpush1.bf16.msra.mxu0 %v2617_v59 }
  0xda   :  { %1919 = vmatprep.subr.bf16.mxu0 %v2622_v61 }
  0xdb   :  { %1434 = vmatpush1.bf16.msra.mxu1 %v2524_v37  ;;  %v2580_v37 = vld [vmem:[#allocation5 + $0x54c] ss:$16 sps:$4 sm:$0xff]  }
  0xdc   :  { %1435 = vmatprep.subr.bf16.mxu1 %v2529_v39  ;;  %v2583_v39 = vld [vmem:[#allocation5 + $0x56c] ss:$16 sps:$4 sm:$0xff]  }
  0xdd   :  { %1920 = vmatpush1.bf16.msra.mxu0 %v2620_v63 }
  0xde   :  { %1921 = vmatprep.subr.bf16.mxu0 %v2625_v1 }
  0xdf   :  { %1436 = vmatpush1.bf16.msra.mxu1 %v2527_v41  ;;  %v2586_v41 = vld [vmem:[#allocation5 + $0x58c] ss:$16 sps:$4 sm:$0xff]  }
  0xe0   :  { %1437 = vmatprep.subr.bf16.mxu1 %v2532_v43  ;;  %v2589_v43 = vld [vmem:[#allocation5 + $0x5ac] ss:$16 sps:$4 sm:$0xff]  }
  0xe1   :  { %1922 = vmatpush1.bf16.msra.mxu0 %v2623_v3 }
  0xe2   :  { %1923 = vmatprep.subr.bf16.mxu0 %v2628_v5 }
  0xe3   :  { %1438 = vmatpush1.bf16.msra.mxu1 %v2530_v45  ;;  %v2592_v45 = vld [vmem:[#allocation5 + $0x5cc] ss:$16 sps:$4 sm:$0xff]  }
  0xe4   :  { %1439 = vmatprep.subr.bf16.mxu1 %v2535_v47  ;;  %v2595_v47 = vld [vmem:[#allocation5 + $0x5ec] ss:$16 sps:$4 sm:$0xff]  }
  0xe5   :  { %1924 = vmatpush1.bf16.msra.mxu0 %v2626_v8 }
  0xe6   :  { %1925 = vmatprep.subr.bf16.mxu0 %v2631_v10  ;;  %v2649_v10 = vld [vmem:[#allocation7 + $0x114] ss:$8 sps:$4 sm:$0xff]  }
  0xe7   :  { %1440 = vmatpush1.bf16.msra.mxu1 %v2533_v49 }
  0xe8   :  { %1441 = vmatprep.subr.bf16.mxu1 %v2538_v51 }
  0xe9   :  { %1926 = vmatpush1.bf16.msra.mxu0 %v2629_v14  ;;  %v2650_v14 = vld [vmem:[#allocation7 + $0x120] ss:$8 sps:$4 sm:$0xff]  }
  0xea   :  { %1927 = vmatprep.subr.bf16.mxu0 %v2634_v15  ;;  %v2655_v15 = vld [vmem:[#allocation7 + $0x134] ss:$8 sps:$4 sm:$0xff]  }
  0xeb   :  { %1442 = vmatpush1.bf16.msra.mxu1 %v2536_v54  ;;  %v273_v54 = vlaneseq }
  0xec   :  { %1443 = vmatprep.subr.bf16.mxu1 %v2541_v56 }
  0xed   :  { %1928 = vmatpush1.bf16.msra.mxu0 %v2632_v19  ;;  %v2872_v55 = vshrl.u32 %v273_v54, 7  ;;  %v2656_v19 = vld [vmem:[#allocation7 + $0x140] ss:$8 sps:$4 sm:$0xff]   ;;  %v1571_v54 = vld [vmem:[%s2910_s4] sm:$0x3] }
  0xee   :  { %1929 = vmatprep.subr.bf16.mxu0 %v2637_v20  ;;  %v2661_v20 = vld [vmem:[#allocation7 + $0x154] ss:$8 sps:$4 sm:$0xff]  }
  0xef   :  { %1444 = vmatpush1.bf16.msra.mxu1 %v2539_v58  ;;  %v2875_v56 = vsub.s32 0, %v2872_v55  ;;  %v2883_v58 = vsub.s32 1, %v2872_v55 }
  0xf0   :  { %1445 = vmatprep.subr.bf16.mxu1 %v2544_v60 }
  0xf1   :  { %v280_v59 = vrot.slane %v2880_v57, %v2883_v58 }
  0xf3   :  { %1446 = vmatpush1.bf16.msra.mxu1 %v2542_v62 }
  0xf4   :  { %1447 = vmatprep.subr.bf16.mxu1 %v2547_v0 }
  0xf7   :  { %1448 = vmatpush1.bf16.msra.mxu1 %v2545_v2 }
  0xf8   :  { %1458 = vmatprep.subr.bf16.mxu1 %v2550_v4 }
  0xfa   :  { %1450 = vmatmul.mubr.bf16.vlgmr.msra.gmra.mrb[4].mxu1 %v2856_v12  ;;  %v2557_v12 = vld [vmem:[#allocation5 + $0x468] ss:$16 sps:$4 sm:$0xff]  }
  0xfb   :  { %1459 = vmatpush1.bf16.msra.mxu1 %v2548_v6  ;;  %1490 = vmatprep.mubr.bf16.mxu1 %v2861_v36  ;;  %v2635_v36 = vld [vmem:[#allocation7 + $0xd0] ss:$8 sps:$4 sm:$0xff]  }
  0xfc   :  { %1460 = vmatprep.subr.bf16.mxu1 %v2553_v7  ;;  %1930 = vmatpush1.bf16.msra.mxu0 %v2635_v36  ;;  %v2644_v7 = vld [vmem:[#allocation7 + $0x100] ss:$8 sps:$4 sm:$0xff]  }
  0xfd   :  { %1931 = vmatprep.subr.bf16.mxu0 %v2640_v26  ;;  %v2662_v36 = vld [vmem:[#allocation7 + $0x160] ss:$8 sps:$4 sm:$0xff]   ;;  %v2673_v26 = vld [vmem:[#allocation7 + $0x194] ss:$8 sps:$4 sm:$0xff]  }
  0xff   :  { %1461 = vmatpush1.bf16.msra.mxu1 %v2551_v11  ;;  %v2647_v11 = vld [vmem:[#allocation7 + $0x110] ss:$8 sps:$4 sm:$0xff]  }
 0x100   :  { %1462 = vmatprep.subr.bf16.mxu1 %v2556_v13  ;;  %1932 = vmatpush1.bf16.msra.mxu0 %v2638_v27  ;;  %v2652_v13 = vld [vmem:[#allocation7 + $0x124] ss:$8 sps:$4 sm:$0xff]   ;;  %v2671_v27 = vld [vmem:[#allocation7 + $0x190] ss:$8 sps:$4 sm:$0xff]  }
 0x101   :  { %1933 = vmatprep.subr.bf16.mxu0 %v2643_v53  ;;  %v2679_v53 = vld [vmem:[#allocation7 + $0x1b4] ss:$8 sps:$4 sm:$0xff]  }
 0x103   :  { %1463 = vmatpush1.bf16.msra.mxu1 %v2554_v17  ;;  %v2653_v17 = vld [vmem:[#allocation7 + $0x130] ss:$8 sps:$4 sm:$0xff]  }
 0x104   :  { %1464 = vmatprep.subr.bf16.mxu1 %v2559_v18  ;;  %1934 = vmatpush1.bf16.msra.mxu0 %v2641_v29  ;;  %v2658_v18 = vld [vmem:[#allocation7 + $0x144] ss:$8 sps:$4 sm:$0xff]   ;;  %v2677_v29 = vld [vmem:[#allocation7 + $0x1b0] ss:$8 sps:$4 sm:$0xff]  }
 0x105   :  { %1944 = vmatprep.subr.bf16.mxu0 %v2646_v32  ;;  %v2685_v32 = vld [vmem:[#allocation7 + $0x1d4] ss:$8 sps:$4 sm:$0xff]  }
 0x107   :  { %1465 = vmatpush1.bf16.msra.mxu1 %v2557_v12  ;;  %v2659_v12 = vld [vmem:[#allocation7 + $0x150] ss:$8 sps:$4 sm:$0xff]  }
 0x108   :  { %1466 = vmatprep.subr.bf16.mxu1 %v2562_v21  ;;  %v2664_v21 = vld [vmem:[#allocation7 + $0x164] ss:$8 sps:$4 sm:$0xff]  }
 0x10b   :  { %1467 = vmatpush1.bf16.msra.mxu1 %v2560_v22  ;;  %v2667_v22 = vld [vmem:[#allocation7 + $0x174] ss:$8 sps:$4 sm:$0xff]  }
 0x10c   :  { %1468 = vmatprep.subr.bf16.mxu1 %v2565_v23  ;;  %v2665_v23 = vld [vmem:[#allocation7 + $0x170] ss:$8 sps:$4 sm:$0xff]  }
 0x10f   :  { %1469 = vmatpush1.bf16.msra.mxu1 %v2563_v24  ;;  %v2670_v24 = vld [vmem:[#allocation7 + $0x184] ss:$8 sps:$4 sm:$0xff]  }
 0x110   :  { %1470 = vmatprep.subr.bf16.mxu1 %v2568_v25  ;;  %v2668_v25 = vld [vmem:[#allocation7 + $0x180] ss:$8 sps:$4 sm:$0xff]  }
 0x113   :  { %1471 = vmatpush1.bf16.msra.mxu1 %v2566_v28  ;;  %v2676_v28 = vld [vmem:[#allocation7 + $0x1a4] ss:$8 sps:$4 sm:$0xff]  }
 0x114   :  { %1472 = vmatprep.subr.bf16.mxu1 %v2571_v9  ;;  %v2674_v9 = vld [vmem:[#allocation7 + $0x1a0] ss:$8 sps:$4 sm:$0xff]  }
 0x117   :  { %1473 = vmatpush1.bf16.msra.mxu1 %v2569_v30  ;;  %v2682_v30 = vld [vmem:[#allocation7 + $0x1c4] ss:$8 sps:$4 sm:$0xff]  }
 0x118   :  { %1474 = vmatprep.subr.bf16.mxu1 %v2574_v31  ;;  %v2680_v31 = vld [vmem:[#allocation7 + $0x1c0] ss:$8 sps:$4 sm:$0xff]  }
 0x11b   :  { %1475 = vmatpush1.bf16.msra.mxu1 %v2572_v33  ;;  %v2683_v33 = vld [vmem:[#allocation7 + $0x1d0] ss:$8 sps:$4 sm:$0xff]  }
 0x11c   :  { %1476 = vmatprep.subr.bf16.mxu1 %v2577_v34  ;;  %v2688_v34 = vld [vmem:[#allocation7 + $0x1e4] ss:$8 sps:$4 sm:$0xff]  }
 0x11f   :  { %1477 = vmatpush1.bf16.msra.mxu1 %v2575_v35  ;;  %v2686_v35 = vld [vmem:[#allocation7 + $0x1e0] ss:$8 sps:$4 sm:$0xff]  }
 0x120   :  { %1478 = vmatprep.subr.bf16.mxu1 %v2580_v37  ;;  %v2691_v37 = vld [vmem:[#allocation7 + $0x1f4] ss:$8 sps:$4 sm:$0xff]  }
 0x123   :  { %1479 = vmatpush1.bf16.msra.mxu1 %v2578_v38  ;;  %v2689_v38 = vld [vmem:[#allocation7 + $0x1f0] ss:$8 sps:$4 sm:$0xff]  }
 0x124   :  { %1480 = vmatprep.subr.bf16.mxu1 %v2583_v39  ;;  %v283_v39 = vsub.s32 2, %v2872_v55 }
 0x127   :  { %1481 = vmatpush1.bf16.msra.mxu1 %v2581_v40  ;;  %v287_v40 = vsub.s32 3, %v2872_v55  ;;  %v1576_v55 = vrot.slane %v1571_v54, %v2875_v56 }
 0x128   :  { %1482 = vmatprep.subr.bf16.mxu1 %v2586_v41  ;;  %v284_v41 = vrot.slane %v2880_v57, %v283_v39 }
 0x12b   :  { %1483 = vmatpush1.bf16.msra.mxu1 %v2584_v42  ;;  %v288_v42 = vrot.slane %v2880_v57, %v287_v40 }
 0x12c   :  { %1484 = vmatprep.subr.bf16.mxu1 %v2589_v43 }
 0x12f   :  { %1485 = vmatpush1.bf16.msra.mxu1 %v2587_v44 }
 0x130   :  { %1486 = vmatprep.subr.bf16.mxu1 %v2592_v45 }
 0x133   :  { %1487 = vmatpush1.bf16.msra.mxu1 %v2590_v46 }
 0x134   :  { %1488 = vmatprep.subr.bf16.mxu1 %v2595_v47 }
 0x137   :  { %1489 = vmatpush1.bf16.msra.mxu1 %v2593_v48 }
 0x13a   :  { %1491 = vmatmul.mubr.bf16.vlgmr.msra.gmra.mrb[4].mxu1 %v2864_v16  ;;  %v276_v16 = vrot.slane %v2880_v57, %v2875_v56  ;;  %v1580_v57 = vrot.slane %v1571_v54, %v2883_v58 }
 0x14d   :  { %v1287_v49 = vpop.f32.mrb[0].mxu1 }
 0x14e   :  { %v1289_v50 = vpop.f32.mrb[1].mxu1  ;;  %v1288_v60 = vadd.f32 %v1287_v49, %v276_v16  ;;  %v1987_v16 = vld [vmem:[%s2911_s5] sm:$0x3] }
 0x14f   :  { %v1291_v51 = vpop.f32.mrb[2].mxu1  ;;  %v1290_v61 = vadd.f32 %v1289_v50, %v280_v59 }
 0x150   :  { %v1292_v52 = vpop.f32.mrb[3].mxu1 }
 0x18e   :  { %v1369_v62 = vpop.f32.mrb[0].mxu0 }
 0x18f   :  { %v2278_v63 = vadd.f32 %v1369_v62, %v1288_v60  ;;  %v1371_v0 = vpop.f32.mrb[1].mxu0  ;;  %v1992_v62 = vrot.slane %v1987_v16, %v2875_v56 }
 0x190   :  { %v2280_v1 = vadd.f32 %v1371_v0, %v1290_v61  ;;  %v1373_v2 = vpop.f32.mrb[2].mxu0 }
 0x191   :  { %v1499_v3 = vmax.f32 %v2278_v63, 0.0  ;;  %v1374_v4 = vpop.f32.mrb[3].mxu0 }
 0x192   :  { %v1500_v5 = vmax.f32 %v2280_v1, 0.0  ;;  %v1996_v1 = vrot.slane %v1987_v16, %v2883_v58 }
 0x193   :  { %v1503_v8 = vpack.c.bf16 %v1499_v3, %v1499_v3 }
 0x194   :  { %v1504_v6 = vpack.c.bf16 %v1500_v5, %v1500_v5 }
 0x196   :  { %1935 = vmatprep.mubr.bf16.mxu0 %v1504_v6 }
 0x197   :  { %1936 = vmatmul.mubr.bf16.vlgmr.msra.gmra.mrb[4].mxu0 %v1503_v8  ;;  %v2276_v8 = vld [vmem:[#allocation2] ss:$0 sm:$0xff] }
 0x198   :  { %1945 = vmatpush1.bf16.msra.mxu0 %v2644_v7 }
 0x199   :  { %1946 = vmatprep.subr.bf16.mxu0 %v2649_v10 }
 0x19c   :  { %1947 = vmatpush1.bf16.msra.mxu0 %v2647_v11 }
 0x19d   :  { %1948 = vmatprep.subr.bf16.mxu0 %v2652_v13 }
 0x1a0   :  { %1949 = vmatpush1.bf16.msra.mxu0 %v2650_v14 }
 0x1a1   :  { %1950 = vmatprep.subr.bf16.mxu0 %v2655_v15 }
 0x1a4   :  { %1951 = vmatpush1.bf16.msra.mxu0 %v2653_v17 }
 0x1a5   :  { %1952 = vmatprep.subr.bf16.mxu0 %v2658_v18 }
 0x1a8   :  { %1953 = vmatpush1.bf16.msra.mxu0 %v2656_v19 }
 0x1a9   :  { %1954 = vmatprep.subr.bf16.mxu0 %v2661_v20 }
 0x1ac   :  { %1955 = vmatpush1.bf16.msra.mxu0 %v2659_v12 }
 0x1ad   :  { %1956 = vmatprep.subr.bf16.mxu0 %v2664_v21 }
 0x1b0   :  { %1957 = vmatpush1.bf16.msra.mxu0 %v2662_v36 }
 0x1b1   :  { %1958 = vmatprep.subr.bf16.mxu0 %v2667_v22 }
 0x1b4   :  { %1959 = vmatpush1.bf16.msra.mxu0 %v2665_v23 }
 0x1b5   :  { %1960 = vmatprep.subr.bf16.mxu0 %v2670_v24 }
 0x1b8   :  { %1961 = vmatpush1.bf16.msra.mxu0 %v2668_v25 }
 0x1b9   :  { %1962 = vmatprep.subr.bf16.mxu0 %v2673_v26 }
 0x1bc   :  { %1963 = vmatpush1.bf16.msra.mxu0 %v2671_v27 }
 0x1bd   :  { %1964 = vmatprep.subr.bf16.mxu0 %v2676_v28 }
 0x1c0   :  { %1965 = vmatpush1.bf16.msra.mxu0 %v2674_v9 }
 0x1c1   :  { %1966 = vmatprep.subr.bf16.mxu0 %v2679_v53 }
 0x1c4   :  { %1967 = vmatpush1.bf16.msra.mxu0 %v2677_v29 }
 0x1c5   :  { %1968 = vmatprep.subr.bf16.mxu0 %v2682_v30 }
 0x1c8   :  { %1969 = vmatpush1.bf16.msra.mxu0 %v2680_v31 }
 0x1c9   :  { %1970 = vmatprep.subr.bf16.mxu0 %v2685_v32 }
 0x1cc   :  { %1971 = vmatpush1.bf16.msra.mxu0 %v2683_v33 }
 0x1cd   :  { %1972 = vmatprep.subr.bf16.mxu0 %v2688_v34 }
 0x1d0   :  { %1973 = vmatpush1.bf16.msra.mxu0 %v2686_v35 }
 0x1d1   :  { %1974 = vmatprep.subr.bf16.mxu0 %v2691_v37 }
 0x1d4   :  { %1975 = vmatpush1.bf16.msra.mxu0 %v2689_v38 }
 0x20d   :  { %v1492_v43 = vpop.f32.mrb[4].mxu1 }
 0x20e   :  { %v2281_v44 = vadd.f32 %v1492_v43, %v284_v41  ;;  %v1494_v45 = vpop.f32.mrb[5].mxu1 }
 0x20f   :  { %v2282_v46 = vadd.f32 %v1494_v45, %v288_v42  ;;  %v1496_v47 = vpop.f32.mrb[6].mxu1 }
 0x210   :  { %v1501_v48 = vmax.f32 %v2281_v44, 0.0  ;;  %v1497_v49 = vpop.f32.mrb[7].mxu1 }
 0x211   :  { %v1502_v50 = vmax.f32 %v2282_v46, 0.0 }
 0x212   :  { %v1505_v52 = vpack.c.bf16 %v1501_v48, %v1501_v48 }
 0x213   :  { %v1506_v51 = vpack.c.bf16 %v1502_v50, %v1502_v50 }
 0x215   :  { %1976 = vmatprep.mubr.bf16.mxu0 %v1506_v51 }
 0x216   :  { %1977 = vmatmul.mubr.bf16.vlgmr.msra.gmra.mrb[4].mxu0 %v1505_v52 }
 0x2e9   :  { %v1978_v59 = vpop.f32.mrb[4].mxu0 }
 0x2ea   :  { %v2283_v60 = vadd.f32 %v1978_v59, %v1576_v55  ;;  %v1980_v61 = vpop.f32.mrb[5].mxu0 }
 0x2eb   :  { %v2284_v63 = vadd.f32 %v1980_v61, %v1580_v57  ;;  %v1982_v0 = vpop.f32.mrb[6].mxu0 }
 0x2ec   :  { %v1985_v2 = vmax.f32 %v2283_v60, 0.0  ;;  %v1983_v3 = vpop.f32.mrb[7].mxu0 }
 0x2ed   :  { %v1986_v4 = vmax.f32 %v2284_v63, 0.0 }
 0x2ee   :  { %v1999_v5 = vmul.f32 %v1992_v62, %v1985_v2 }
 0x2ef   :  { %v2000_v6 = vmul.f32 %v1996_v1, %v1986_v4 }
 0x2f1   :  { %v2001_v7 = vadd.f32 %v2000_v6, %v1999_v5 }
 0x2f3   :  { %2002 = vadd.xlane.f32.xlu0 %v2001_v7 }
 0x380   :  { %v2003_v10 = vpop.xlane.xlu0 %2002 }
 0x381   :  { %v2011_v11 = vadd.f32 %v2276_v8, %v2003_v10 }
 0x383   :  { %2013 = vst.msk [vmem:[%s2913_s7] sm:$0xff] %vm2012_vm0, %v2011_v11 }
 0x384   :  { %2018 = vsyncpa [#allocation4], 1 }
 0x385   :  { %2019 = vsyncpa [#allocation6], 1 }

</bundles_post_ra>
